<compile_context>
chip_gen: v5e
topology: v5e:2x2
jax: 0.10.0
libtpu: 0.0.40
codegen_flags: <defaults>
</compile_context>

<pallas_src>
import jax
import jax.numpy as jnp
from jax.experimental import pallas as pl
from jax.experimental.pallas import tpu as pltpu

K = 128            # number of gaussian kernels
EDGE_TYPES = 1024
PI = 3.14159       # matches the torch.jit.script constant exactly
A = (2.0 * PI) ** 0.5
SQRT2 = 2.0 ** 0.5
LOG2E = 1.4426950408889634
SQRT_LOG2E = LOG2E ** 0.5

_LANE = 128
_VMEM_CAP_BYTES = 24 << 20   # padded double-buffered budget cap (safe on v7x)


def _gaussian_kernel(t_ref, p_ref, o_ref):
    # t_ref: (TR, 1) f32 ; p_ref: (3, K) f32 [mean, inv_std_scaled, coeff]
    # o_ref: (TR, K) in the final output dtype
    mean = p_ref[0, :]
    inv = p_ref[1, :]
    coeff = p_ref[2, :]
    z = (t_ref[...] - mean) * inv                 # (TR, K) broadcast
    # exp(-0.5*u^2) == exp2(-(z)^2) with sqrt(log2 e)/sqrt(2) folded into inv.
    o_ref[...] = (jnp.exp2(-(z * z)) * coeff).astype(o_ref.dtype)


def _pick_tile_rows(R, requested, out_bytes):
    """Clamp tile size: VMEM budget (lane-padded input!), >=4 grid steps for
    pipelining / 2-TC sharding, multiple of 8 sublanes, prefer even step count."""
    # Double-buffered bytes per row: input lane-pads to (TR,128) f32.
    per_row = 2 * (_LANE * 4 + _LANE * out_bytes)
    vmem_cap = max(8, (_VMEM_CAP_BYTES // per_row) // 8 * 8)

    tr = min(requested, vmem_cap, max(8, R // 4))
    tr = max(8, (tr // 8) * 8)

    # Prefer an even number of grid steps (balanced across v7x's 2 TCs).
    n = -(-R // tr)
    if n > 1 and n % 2 == 1:
        tr2 = max(8, ((-(-R // (n + 1))) + 7) // 8 * 8)
        if tr2 <= vmem_cap and (-(-R // tr2)) % 2 == 0:
            tr = tr2
    return tr


def _vmem_limit_bytes(tr, out_bytes):
    in_buf = tr * _LANE * 4            # (TR,1) f32 lane-padded
    out_buf = tr * _LANE * out_bytes   # (TR,128) output
    params = 8 * _LANE * 4             # (3,K) padded to (8,128)
    return 2 * (in_buf + out_buf) + 2 * params + (2 << 20)   # + slack


def gaussian_layer(x, edge_type, means_w, stds_w, mul_w, bias_w, *, tile_rows=8192):
    """x: [B, N, N] float, edge_type: [B, N, N] int32 -> [B, N, N, K] (dtype of means_w)."""
    B, N, M = x.shape
    assert M == N
    out_dtype = means_w.dtype
    out_bytes = jnp.dtype(out_dtype).itemsize

    # --- glue (fuses in XLA): embedding gather + affine, single f32 column ---
    mul = mul_w[edge_type, 0].astype(x.dtype)     # [B, N, N]
    bias = bias_w[edge_type, 0].astype(x.dtype)   # [B, N, N]
    t = (mul * x + bias).astype(jnp.float32)      # [B, N, N]

    R = B * N * N
    t_flat = t.reshape(R, 1)

    # --- grid-invariant parameters, exact divides done once, packed (3, K) ---
    mean = means_w.astype(jnp.float32).reshape(1, K)
    std = jnp.abs(stds_w.astype(jnp.float32)).reshape(1, K) + 1e-5
    inv_std_scaled = SQRT_LOG2E / (std * SQRT2)   # exp2(-z^2) == exp(-0.5*u^2)
    coeff = 1.0 / (A * std)
    params = jnp.concatenate([mean, inv_std_scaled, coeff], axis=0)   # (3, K)

    tr = _pick_tile_rows(R, tile_rows, out_bytes)
    grid = (pl.cdiv(R, tr),)

    row_spec = pl.BlockSpec((tr, 1), lambda i: (i, 0))
    par_spec = pl.BlockSpec((3, K), lambda i: (0, 0))

    out = pl.pallas_call(
        _gaussian_kernel,
        out_shape=jax.ShapeDtypeStruct((R, K), out_dtype),
        grid_spec=pltpu.PrefetchScalarGridSpec(
            num_scalar_prefetch=0,
            grid=grid,
            in_specs=[row_spec, par_spec],
            out_specs=pl.BlockSpec((tr, K), lambda i: (i, 0)),
        ),
        compiler_params=pltpu.CompilerParams(
            dimension_semantics=("parallel",),
            vmem_limit_bytes=_vmem_limit_bytes(tr, out_bytes)),
    )(t_flat, params)

    return out.reshape(B, N, N, K)


def _reference(x, edge_type, means_w, stds_w, mul_w, bias_w):
    mul = mul_w[edge_type].astype(x.dtype)              # [B,N,N,1]
    bias = bias_w[edge_type].astype(x.dtype)
    t = mul * x[..., None] + bias                        # [B,N,N,1]
    t = jnp.broadcast_to(t, t.shape[:-1] + (K,)).astype(jnp.float32)
    mean = means_w.astype(jnp.float32).reshape(-1)
    std = jnp.abs(stds_w.astype(jnp.float32)).reshape(-1) + 1e-5
    out = jnp.exp(-0.5 * ((t - mean) / std) ** 2) / (A * std)
    return out.astype(means_w.dtype)


if __name__ == "__main__":
    key = jax.random.PRNGKey(0)
    k_means, k_stds, k_x, k_e = jax.random.split(key, 4)

    # deterministic parameter init (matches nn.init in __init__)
    means_w = jax.random.uniform(k_means, (1, K), jnp.float32, 0.0, 3.0)  # Embedding(1, K)
    stds_w = jax.random.uniform(k_stds, (1, K), jnp.float32, 0.0, 3.0)    # Embedding(1, K)
    mul_w = jnp.ones((EDGE_TYPES, 1), jnp.float32)                        # constant 1
    bias_w = jnp.zeros((EDGE_TYPES, 1), jnp.float32)                      # constant 0

    # small example inputs
    B, N = 2, 16
    x = jax.random.normal(k_x, (B, N, N), jnp.float32) * 2.0 + 1.0
    edge_type = jax.random.randint(k_e, (B, N, N), 0, EDGE_TYPES, jnp.int32)

    out = gaussian_layer(x, edge_type, means_w, stds_w, mul_w, bias_w)
    out = jax.block_until_ready(out)

    ref = _reference(x, edge_type, means_w, stds_w, mul_w, bias_w)
    assert out.shape == (B, N, N, K)
    assert out.dtype == means_w.dtype
    assert jnp.allclose(out, ref, atol=1e-5, rtol=1e-5)

    print("KERNEL_OK")
</pallas_src>

<mosaic_0001>
module attributes {stable_mosaic.version = 11 : i64} {
  func.func @_gaussian_kernel(%arg0: i32, %arg1: memref<128x1xf32, #tpu.memory_space<vmem>>, %arg2: memref<3x128xf32, #tpu.memory_space<vmem>>, %arg3: memref<128x128xf32, #tpu.memory_space<vmem>>) attributes {dimension_semantics = [#tpu.dimension_semantics<parallel>], iteration_bounds = array<i64: 4>, scalar_prefetch = 0 : i64, scratch_operands = 0 : i64, tpu.core_type = #tpu.core_type<tc>, window_params = [{transform_indices = @transform_0, window_bounds = array<i64: 128, 1>}, {pipeline_mode = #tpu.pipeline_mode<synchronous>, transform_indices = @transform_1, window_bounds = array<i64: 3, 128>}, {transform_indices = @transform_2, window_bounds = array<i64: 128, 128>}]} {
    %c0 = arith.constant 0 : index
    %c0_0 = arith.constant 0 : index
    %0 = vector.load %arg2[%c0, %c0_0] : memref<3x128xf32, #tpu.memory_space<vmem>>, vector<1x128xf32>
    %1 = vector.shape_cast %0 : vector<1x128xf32> to vector<128xf32>
    %c1 = arith.constant 1 : index
    %c0_1 = arith.constant 0 : index
    %2 = vector.load %arg2[%c1, %c0_1] : memref<3x128xf32, #tpu.memory_space<vmem>>, vector<1x128xf32>
    %3 = vector.shape_cast %2 : vector<1x128xf32> to vector<128xf32>
    %c2 = arith.constant 2 : index
    %c0_2 = arith.constant 0 : index
    %4 = vector.load %arg2[%c2, %c0_2] : memref<3x128xf32, #tpu.memory_space<vmem>>, vector<1x128xf32>
    %5 = vector.shape_cast %4 : vector<1x128xf32> to vector<128xf32>
    %c0_3 = arith.constant 0 : index
    %c0_4 = arith.constant 0 : index
    %6 = vector.load %arg1[%c0_3, %c0_4] : memref<128x1xf32, #tpu.memory_space<vmem>>, vector<128x1xf32>
    %7 = vector.shape_cast %1 : vector<128xf32> to vector<1x128xf32>
    %8 = vector.broadcast %6 : vector<128x1xf32> to vector<128x128xf32>
    %9 = vector.broadcast %7 : vector<1x128xf32> to vector<128x128xf32>
    %10 = arith.subf %8, %9 : vector<128x128xf32>
    %11 = vector.shape_cast %3 : vector<128xf32> to vector<1x128xf32>
    %12 = vector.broadcast %11 : vector<1x128xf32> to vector<128x128xf32>
    %13 = arith.mulf %10, %12 : vector<128x128xf32>
    %14 = arith.mulf %13, %13 : vector<128x128xf32>
    %cst = arith.constant 0.000000e+00 : f32
    %15 = vector.broadcast %cst : f32 to vector<128x128xf32>
    %16 = arith.subf %15, %14 : vector<128x128xf32>
    %17 = math.exp2 %16 : vector<128x128xf32>
    %18 = vector.shape_cast %5 : vector<128xf32> to vector<1x128xf32>
    %19 = vector.broadcast %18 : vector<1x128xf32> to vector<128x128xf32>
    %20 = arith.mulf %17, %19 : vector<128x128xf32>
    %c0_5 = arith.constant 0 : index
    %c0_6 = arith.constant 0 : index
    %21 = vector.load %arg3[%c0_5, %c0_6] : memref<128x128xf32, #tpu.memory_space<vmem>>, vector<128x128xf32>
    tpu.vector_store %arg3[%c0_5, %c0_6], %20 {strides = array<i32>} : memref<128x128xf32, #tpu.memory_space<vmem>>, vector<128x128xf32>,
    return
  }
  func.func @transform_0(%arg0: i32) -> (i32, i32) {
    %c0_i32 = arith.constant 0 : i32
    %c0_i32_0 = arith.constant 0 : i32
    return %arg0, %c0_i32 : i32, i32
  }
  func.func @transform_1(%arg0: i32) -> (i32, i32) {
    %c0_i32 = arith.constant 0 : i32
    %c0_i32_0 = arith.constant 0 : i32
    %c0_i32_1 = arith.constant 0 : i32
    return %c0_i32, %c0_i32_0 : i32, i32
  }
  func.func @transform_2(%arg0: i32) -> (i32, i32) {
    %c0_i32 = arith.constant 0 : i32
    %c0_i32_0 = arith.constant 0 : i32
    return %arg0, %c0_i32 : i32, i32
  }
}

</mosaic_0001>

<bundles_post_ra>
// kernel: tpu_custom_call.1
= control target key start
LH: loop header
LB: loop body
LE: loop exit
PB: predicated region body
PF: predicated region fallthrough
CT: control target
= control target key end

     0   :  { %7 = vsyncpa [#allocation3], 0  ;;  %s800_s0 = inlined_call_operand.vmem [shape: f32[512,1], index: 0, kind: input, shape index: {}]   ;;  %s801_s1 = inlined_call_operand.vmem [shape: f32[3,128], index: 1, kind: input, shape index: {}]   ;;  %s802_s2 = inlined_call_operand.hbm [shape: f32[512,128], index: 2, kind: output, shape index: {}]  }
   0x1   :  { %9 = vsyncpa [#allocation3 + $0x1], 0  ;;  %s612_s9 = smov 0   ;;  %s614_s10 = smov 0  }
   0x2   :  { %s616_s11 = smov 0   ;;  %s618_s12 = smov 0  }
   0x3 LB: > { %s633_s13 = sadd.s32 4294967295, %s592_s12   ;;  %s437_s14 = sadd.s32 4294967294, %s592_s12   ;;  %s592_s12 = sphi %s618_s12, %s808_s12   ;;  %s588_s11 = sphi %s616_s11, %s807_s11   ;;  %s584_s10 = sphi %s614_s10, %s806_s10   ;;  %s580_s9 = sphi %s612_s9, %s805_s9  }
   0x4   : > { %s637_s15 = sadd.s32 1, %s592_s12   ;;  %s69_s16 = sadd.s32 1, %s588_s11 }
   0x5   : > { %s66_s17 = ssub.s32 %s592_s12, %s637_s15  ;;  %p79_p0 = scmp.ne.s32.totalorder %s588_s11, %s584_s10 }
   0x6   : > { %p67_p1 = scmp.eq.s32.totalorder %s66_s17, 0  ;;  %p80_p2 = scmp.eq.s32.totalorder %s633_s13, 3 }
   0x7   : > { %p85_p3 = scmp.ne.s32.totalorder %s584_s10, %s580_s9  ;;  %p86_p4 = scmp.eq.s32.totalorder %s437_s14, 3 }
   0x8   : > { %s648_s18 = scalar_select %p67_p1, %s588_s11, %s69_s16  }
   0x9   : > { %p650_p5 = por %p80_p2, %p79_p0  ;;  %p654_p6 = por %p86_p4, %p85_p3 }
   0xa   : > { %p440_p7 = scmp.ge.s32.totalorder %s592_s12, 1  ;;  %p116_p8 = scmp.lt.s32.totalorder %s592_s12, 5 }
   0xc   : > { %p117_p9 = pnand %p440_p7, %p116_p8 }
   0xd   : > { %s442_s21 = sshll.u32 (!%p117_p9), %s633_s13, 4  ;;  %s135_s30 = sand.u32 (!%p117_p9), 1, %s584_s10  }
   0xe   : > { %120 = sbr.rel (%p117_p9) target bundleno = 200 (0xc8), region = 28  ;;  %p139_p10 = scmp.lt.s32.totalorder (!%p117_p9), %s442_s21, 63 }
   0xf   : > { %s441_s5 = sshll.u32 (!%p117_p9), %s135_s30, 7  ;;  %s449_s7 = sshll.u32 (!%p117_p9), %s633_s13, 7 }
  0x10   : > { %s706_s6 = scalar_lea.vmem (!%p117_p9), [#allocation2], %s441_s5  ;;  %s371_s16 = scalar_lea.hbm (!%p117_p9), %s802_s2, %s449_s7 }
  0x11   : > { %s372_s17 = sshll.u32 (!%p117_p9), %s706_s6, 4  ;;  %s360_s13 = scalar_lea.sflag (!%p117_p9), [#allocation3], %s135_s30  ;;  %s373_s17 = int_to_ptr.vmem [resolvable:$true] %s372_s17 }
  0x12   : > { %s550_s26 = scalar_lea.hbm (!%p117_p9), %s802_s2, 512 }
  0x13   : > { %v594_v0 = vmov 0   ;;  %s810_s21 = smov (!%p139_p10, %s442_s21), 63  ;;  %v685_v17 = vld [vmem:[%s801_s1] ss:$0 sm:$0xff]  ;;  %v690_v19 = vld [vmem:[%s801_s1 + $0x1] ss:$0 sm:$0xff] }
  0x14   : > { %494 = vset.pattern.permute.xlu2 %v594_v0  ;;  %493 = vset.pattern.permute.xlu1 %v594_v0  ;;  %s443_s22 = sshll.u32 %s810_s21, 3  ;;  %v700_v28 = vld [vmem:[%s801_s1 + $0x2] ss:$0 sm:$0xff]  ;;  %s374_s21 = sshll.u32 %s371_s16, 4  ;;  %s375_s21 = int_to_ptr.hbm [resolvable:$true] %s374_s21 }
  0x15   : > { %492 = vset.pattern.permute.xlu0 %v594_v0  ;;  %s664_s25 = scalar_lea.vmem %s800_s0, %s443_s22  ;;  %s544_s22 = sshra.s32 %s375_s21, 4  ;;  %s545_s22 = int_to_ptr.hbm [resolvable:$true] %s544_s22 }
  0x16   : > { %v152_v1 = vld [vmem:[%s664_s25 + $0x20] sm:$0xff]  ;;  %v150_v2 = vld [vmem:[%s664_s25 + $0x10] sm:$0xff]  ;;  %v153_v4 = vld [vmem:[%s664_s25 + $0x28] sm:$0xff]  ;;  %s546_s23 = scalar_lea.hbm %s545_s22, 128  ;;  %p551_p0 = scmp.lt.s32.totalorder %s545_s22, %s802_s2 }
  0x17   : > { %v148_v3 = vld [vmem:[%s664_s25] sm:$0xff]  ;;  %186 = vperm.xlu2 %494, %v152_v1   ;;  %176 = vperm.xlu1 %493, %v150_v2   ;;  %v151_v5 = vld [vmem:[%s664_s25 + $0x18] sm:$0xff]  ;;  %v149_v6 = vld [vmem:[%s664_s25 + $0x8] sm:$0xff]  ;;  %p547_p11 = scmp.ne.s32.totalorder %s545_s22, %s546_s23  ;;  %p552_p1 = scmp.lt.s32.totalorder %s550_s26, %s546_s23 }
  0x18   : > { %166 = vperm.xlu0 %492, %v148_v3   ;;  %v156_v7 = vld [vmem:[%s664_s25 + $0x40] sm:$0xff]  ;;  %v155_v8 = vld [vmem:[%s664_s25 + $0x38] sm:$0xff]  ;;  %v154_v9 = vld [vmem:[%s664_s25 + $0x30] sm:$0xff] }
  0x19   : > { %v159_v10 = vld [vmem:[%s664_s25 + $0x58] sm:$0xff]  ;;  %v158_v11 = vld [vmem:[%s664_s25 + $0x50] sm:$0xff]  ;;  %v157_v12 = vld [vmem:[%s664_s25 + $0x48] sm:$0xff]  ;;  %p548_p12 = pnand %p547_p11, %p650_p5  ;;  %p553_p2 = por %p552_p1, %p551_p0 }
  0x1a   : > { %v162_v13 = vld [vmem:[%s664_s25 + $0x70] sm:$0xff]  ;;  %v161_v14 = vld [vmem:[%s664_s25 + $0x68] sm:$0xff]  ;;  %v160_v15 = vld [vmem:[%s664_s25 + $0x60] sm:$0xff] }
  0x1b   : > { %v163_v16 = vld [vmem:[%s664_s25 + $0x78] sm:$0xff]  ;;  %p549_p13 = pneg %p548_p12 }
  0x1d   : > { %p554_p3 = pnand %p553_p2, %p549_p13 }
  0x1f   : > { %191 = vperm.xlu2 %494, %v153_v4   ;;  %181 = vperm.xlu1 %493, %v151_v5  }
  0x20   : > { %171 = vperm.xlu0 %492, %v149_v6  }
  0x27   : > { %206 = vperm.xlu2 %494, %v156_v7   ;;  %201 = vperm.xlu1 %493, %v155_v8  }
  0x28   : > { %196 = vperm.xlu0 %492, %v154_v9  }
  0x2f   : > { %221 = vperm.xlu2 %494, %v159_v10   ;;  %216 = vperm.xlu1 %493, %v158_v11  }
  0x30   : > { %211 = vperm.xlu0 %492, %v157_v12  }
  0x37   : > { %236 = vperm.xlu2 %494, %v162_v13   ;;  %231 = vperm.xlu1 %493, %v161_v14  }
  0x38   : > { %226 = vperm.xlu0 %492, %v160_v15  }
  0x40   : > { %241 = vperm.xlu0 %492, %v163_v16  }
  0x71   : > { %v187_v18 = vpop.permute.xlu2 %186 }
  0x72   : > { %v249_v20 = vsub.f32 %v187_v18, %v685_v17 }
  0x74   : > { %v266_v21 = vmul.f32 %v690_v19, %v249_v20 }
  0x76   : > { %v282_v22 = vmul.f32 %v266_v21, %v266_v21 }
  0x78   : > { %v298_v23 = vsub.f32 0.0, %v282_v22 }
  0x79   : > { %v192_v24 = vpop.permute.xlu2 %191 }
  0x7a   : > { %498 = vpow2.f32 %v298_v23  ;;  %v250_v25 = vsub.f32 %v192_v24, %v685_v17 }
  0x7c   : > { %v267_v26 = vmul.f32 %v690_v19, %v250_v25 }
  0x7e   : > { %v283_v27 = vmul.f32 %v267_v26, %v267_v26 }
  0x80   : > { %v499_v29 = vpop.eup %498  ;;  %v299_v30 = vsub.f32 0.0, %v283_v27 }
  0x81   : > { %v331_v31 = vmul.f32 %v499_v29, %v700_v28  ;;  %v207_v32 = vpop.permute.xlu2 %206 }
  0x82   : > { %500 = vpow2.f32 %v299_v30  ;;  %v253_v33 = vsub.f32 %v207_v32, %v685_v17 }
  0x83   : > { %347 = vst [vmem:[%s706_s6 + $0x20] sm:$0xff] %v331_v31 }
  0x84   : > { %v270_v34 = vmul.f32 %v690_v19, %v253_v33 }
  0x86   : > { %v286_v35 = vmul.f32 %v270_v34, %v270_v34 }
  0x88   : > { %v501_v36 = vpop.eup %500  ;;  %v302_v37 = vsub.f32 0.0, %v286_v35 }
  0x89   : > { %v332_v38 = vmul.f32 %v501_v36, %v700_v28  ;;  %v222_v39 = vpop.permute.xlu2 %221  ;;  %v177_v40 = vpop.permute.xlu1 %176 }
  0x8a   : > { %502 = vpow2.f32 %v302_v37  ;;  %v256_v41 = vsub.f32 %v222_v39, %v685_v17  ;;  %v247_v42 = vsub.f32 %v177_v40, %v685_v17  ;;  %v167_v43 = vpop.permute.xlu0 %166 }
  0x8b   : > { %348 = vst [vmem:[%s706_s6 + $0x28] sm:$0xff] %v332_v38  ;;  %v245_v44 = vsub.f32 %v167_v43, %v685_v17 }
  0x8c   : > { %v273_v45 = vmul.f32 %v690_v19, %v256_v41  ;;  %v264_v46 = vmul.f32 %v690_v19, %v247_v42 }
  0x8d   : > { %v262_v47 = vmul.f32 %v690_v19, %v245_v44 }
  0x8e   : > { %v289_v48 = vmul.f32 %v273_v45, %v273_v45  ;;  %v280_v49 = vmul.f32 %v264_v46, %v264_v46 }
  0x8f   : > { %v278_v50 = vmul.f32 %v262_v47, %v262_v47 }
  0x90   : > { %v503_v51 = vpop.eup %502  ;;  %v305_v52 = vsub.f32 0.0, %v289_v48  ;;  %v296_v53 = vsub.f32 0.0, %v280_v49 }
  0x91   : > { %v335_v54 = vmul.f32 %v503_v51, %v700_v28  ;;  %v294_v55 = vsub.f32 0.0, %v278_v50  ;;  %v237_v56 = vpop.permute.xlu2 %236  ;;  %v182_v57 = vpop.permute.xlu1 %181 }
  0x92   : > { %504 = vpow2.f32 %v305_v52  ;;  %v259_v58 = vsub.f32 %v237_v56, %v685_v17  ;;  %v248_v59 = vsub.f32 %v182_v57, %v685_v17  ;;  %v172_v60 = vpop.permute.xlu0 %171 }
  0x93   : > { %351 = vst [vmem:[%s706_s6 + $0x40] sm:$0xff] %v335_v54  ;;  %506 = vpow2.f32 %v296_v53  ;;  %v246_v61 = vsub.f32 %v172_v60, %v685_v17 }
  0x94   : > { %508 = vpow2.f32 %v294_v55  ;;  %v276_v62 = vmul.f32 %v690_v19, %v259_v58  ;;  %v265_v63 = vmul.f32 %v690_v19, %v248_v59 }
  0x95   : > { %v263_v0 = vmul.f32 %v690_v19, %v246_v61 }
  0x96   : > { %v292_v1 = vmul.f32 %v276_v62, %v276_v62  ;;  %v281_v2 = vmul.f32 %v265_v63, %v265_v63 }
  0x97   : > { %v279_v3 = vmul.f32 %v263_v0, %v263_v0 }
  0x98   : > { %v505_v4 = vpop.eup %504  ;;  %v308_v5 = vsub.f32 0.0, %v292_v1  ;;  %v297_v6 = vsub.f32 0.0, %v281_v2 }
  0x99   : > { %v507_v7 = vpop.eup %506  ;;  %v338_v8 = vmul.f32 %v505_v4, %v700_v28  ;;  %v295_v9 = vsub.f32 0.0, %v279_v3  ;;  %v202_v10 = vpop.permute.xlu1 %201 }
  0x9a   : > { %v509_v11 = vpop.eup %508  ;;  %v329_v12 = vmul.f32 %v507_v7, %v700_v28  ;;  %510 = vpow2.f32 %v308_v5  ;;  %v252_v13 = vsub.f32 %v202_v10, %v685_v17  ;;  %v197_v14 = vpop.permute.xlu0 %196 }
  0x9b   : > { %354 = vst [vmem:[%s706_s6 + $0x58] sm:$0xff] %v338_v8  ;;  %v327_v15 = vmul.f32 %v509_v11, %v700_v28  ;;  %512 = vpow2.f32 %v297_v6  ;;  %v251_v16 = vsub.f32 %v197_v14, %v685_v17 }
  0x9c   : > { %345 = vst [vmem:[%s706_s6 + $0x10] sm:$0xff] %v329_v12  ;;  %514 = vpow2.f32 %v295_v9  ;;  %v269_v18 = vmul.f32 %v690_v19, %v252_v13 }
  0x9d   : > { %343 = vst [vmem:[%s706_s6] sm:$0xff] %v327_v15  ;;  %v268_v20 = vmul.f32 %v690_v19, %v251_v16 }
  0x9e   : > { %v285_v21 = vmul.f32 %v269_v18, %v269_v18 }
  0x9f   : > { %v284_v22 = vmul.f32 %v268_v20, %v268_v20 }
  0xa0   : > { %v511_v23 = vpop.eup %510  ;;  %v301_v24 = vsub.f32 0.0, %v285_v21 }
  0xa1   : > { %v513_v25 = vpop.eup %512  ;;  %v341_v26 = vmul.f32 %v511_v23, %v700_v28  ;;  %v300_v27 = vsub.f32 0.0, %v284_v22  ;;  %v217_v29 = vpop.permute.xlu1 %216 }
  0xa2   : > { %v515_v30 = vpop.eup %514  ;;  %v330_v31 = vmul.f32 %v513_v25, %v700_v28  ;;  %516 = vpow2.f32 %v301_v24  ;;  %v255_v32 = vsub.f32 %v217_v29, %v685_v17  ;;  %v212_v33 = vpop.permute.xlu0 %211 }
  0xa3   : > { %357 = vst [vmem:[%s706_s6 + $0x70] sm:$0xff] %v341_v26  ;;  %v328_v34 = vmul.f32 %v515_v30, %v700_v28  ;;  %518 = vpow2.f32 %v300_v27  ;;  %v254_v35 = vsub.f32 %v212_v33, %v685_v17 }
  0xa4   : > { %346 = vst [vmem:[%s706_s6 + $0x18] sm:$0xff] %v330_v31  ;;  %v272_v36 = vmul.f32 %v690_v19, %v255_v32 }
  0xa5   : > { %344 = vst [vmem:[%s706_s6 + $0x8] sm:$0xff] %v328_v34  ;;  %v271_v37 = vmul.f32 %v690_v19, %v254_v35 }
  0xa6   : > { %v288_v38 = vmul.f32 %v272_v36, %v272_v36 }
  0xa7   : > { %v287_v39 = vmul.f32 %v271_v37, %v271_v37 }
  0xa8   : > { %v517_v40 = vpop.eup %516  ;;  %v304_v41 = vsub.f32 0.0, %v288_v38 }
  0xa9   : > { %v519_v42 = vpop.eup %518  ;;  %v334_v43 = vmul.f32 %v517_v40, %v700_v28  ;;  %v303_v44 = vsub.f32 0.0, %v287_v39  ;;  %v232_v45 = vpop.permute.xlu1 %231 }
  0xaa   : > { %v333_v46 = vmul.f32 %v519_v42, %v700_v28  ;;  %520 = vpow2.f32 %v304_v41  ;;  %v258_v47 = vsub.f32 %v232_v45, %v685_v17  ;;  %v227_v48 = vpop.permute.xlu0 %226 }
  0xab   : > { %350 = vst [vmem:[%s706_s6 + $0x38] sm:$0xff] %v334_v43  ;;  %522 = vpow2.f32 %v303_v44  ;;  %v257_v49 = vsub.f32 %v227_v48, %v685_v17 }
  0xac   : > { %349 = vst [vmem:[%s706_s6 + $0x30] sm:$0xff] %v333_v46  ;;  %v275_v50 = vmul.f32 %v690_v19, %v258_v47 }
  0xad   : > { %v274_v51 = vmul.f32 %v690_v19, %v257_v49 }
  0xae   : > { %v291_v52 = vmul.f32 %v275_v50, %v275_v50 }
  0xaf   : > { %v290_v53 = vmul.f32 %v274_v51, %v274_v51 }
  0xb0   : > { %v521_v54 = vpop.eup %520  ;;  %v307_v55 = vsub.f32 0.0, %v291_v52 }
  0xb1   : > { %v523_v56 = vpop.eup %522  ;;  %v337_v57 = vmul.f32 %v521_v54, %v700_v28  ;;  %v306_v58 = vsub.f32 0.0, %v290_v53 }
  0xb2   : > { %v336_v59 = vmul.f32 %v523_v56, %v700_v28  ;;  %524 = vpow2.f32 %v307_v55  ;;  %v242_v60 = vpop.permute.xlu0 %241 }
  0xb3   : > { %353 = vst [vmem:[%s706_s6 + $0x50] sm:$0xff] %v337_v57  ;;  %526 = vpow2.f32 %v306_v58  ;;  %v260_v61 = vsub.f32 %v242_v60, %v685_v17 }
  0xb4   : > { %352 = vst [vmem:[%s706_s6 + $0x48] sm:$0xff] %v336_v59 }
  0xb5   : > { %v277_v62 = vmul.f32 %v690_v19, %v260_v61 }
  0xb7   : > { %v293_v63 = vmul.f32 %v277_v62, %v277_v62 }
  0xb8   : > { %v525_v0 = vpop.eup %524 }
  0xb9   : > { %v527_v1 = vpop.eup %526  ;;  %v340_v2 = vmul.f32 %v525_v0, %v700_v28  ;;  %v309_v3 = vsub.f32 0.0, %v293_v63 }
  0xba   : > { %v339_v4 = vmul.f32 %v527_v1, %v700_v28 }
  0xbb   : > { %356 = vst [vmem:[%s706_s6 + $0x68] sm:$0xff] %v340_v2  ;;  %528 = vpow2.f32 %v309_v3 }
  0xbc   : > { %355 = vst [vmem:[%s706_s6 + $0x60] sm:$0xff] %v339_v4 }
  0xc1   : > { %v529_v17 = vpop.eup %528 }
  0xc2   : > { %v342_v19 = vmul.f32 %v529_v17, %v700_v28 }
  0xc4   : > { %358 = vst [vmem:[%s706_s6 + $0x78] sm:$0xff] %v342_v19 }
  0xc5   : > { %557 = shalt.err (!%p554_p3)
}
  0xc6   : > { %s595_s29 = smov 128   ;;  %s596_s30 = smov 8  }
  0xc7   : > { %450 = dma.vmem_to_hbm [thread:$0]  (%p650_p5), %s373_s17, 2048, %s375_s21, %s360_s13, %s595_s29, %s595_s29, %s596_s30  }
  0xc8 PF: > { %p456_p4 = scmp.ge.s32.totalorder %s592_s12, 2  ;;  %s389_s3 = sand.u32 1, %s580_s9  }
  0xc9   : > { %s390_s4 = scalar_lea.sflag [#allocation3], %s389_s3 }
  0xca   : > { %p453_p7 = pnand %p456_p4, %p654_p6 }
  0xcc   : > { %p454_p8 = pneg %p453_p7 }
  0xce   : > { %575 = dma.done.wait (%p454_p8), %s390_s4, 2048  }
  0xcf   : > { %577 = vsyncadd (%p454_p8), %s390_s4, 4294965248  ;;  %p12_p9 = scmp.ge.s32.totalorder %s637_s15, 6   ;;  %s805_s9 = smov %s584_s10 }
  0xd0   : > { %s806_s10 = smov %s588_s11  ;;  %s807_s11 = smov %s648_s18 }
  0xd1   : > { %s808_s12 = smov %s637_s15  ;;  %14 = sbr.rel (!%p12_p9) target bundleno = 3 (0x3), region = 63 }
  0xd6   :  { %396 = vsyncpa [#allocation3], 1 }
  0xd7   :  { %398 = vsyncpa [#allocation3 + $0x1], 1 }

</bundles_post_ra>
